<compile_context>
chip_gen: v5e
topology: v5e:2x2
jax: 0.10.0
libtpu: 0.0.40
codegen_flags: <defaults>
</compile_context>

<pallas_src>
import functools
import math

import jax
import jax.numpy as jnp
from jax.experimental import pallas as pl
from jax.experimental.pallas import tpu as pltpu

_LANE = 128
_TARGET_TILE_BYTES = 4 * 1024 * 1024      # ~4 MiB tiles (safe on every generation)
_VMEM_LIMIT_BYTES = 48 * 1024 * 1024      # >> footprint, < v7x 64 MiB physical


# ----------------------------------------------------------------------------
# Kernels
# ----------------------------------------------------------------------------
def _drop_path_kernel_per_sample(keep_ref, x_ref, o_ref, *, inv_keep_prob):
    """grid = (B, n_tiles); one step = one (1, tr, 128) tile of one sample.

    keep_ref: (B,) int32 in SMEM (scalar prefetch).  Dropped samples write
    zeros without reading x (their input DMA was elided via the index_map).
    """
    b = pl.program_id(0)

    @pl.when(keep_ref[b] == 0)
    def _():
        o_ref[...] = jnp.zeros_like(o_ref)

    @pl.when(keep_ref[b] != 0)
    def _():
        # Native-dtype multiply; python-float scale keeps the dtype (weak type).
        o_ref[...] = (x_ref[...] * inv_keep_prob).astype(o_ref.dtype)


def _drop_path_kernel_batch_cols(scale_ref, x_ref, o_ref):
    """grid = (n_col_tiles,); one step = a (B, tf) column slab of all samples.

    scale_ref: (B, 1) f32 per-sample scale (0 or 1/keep_prob), broadcast over
    the lane axis.
    """
    scale = scale_ref[...].astype(x_ref.dtype)          # (B, 1)
    o_ref[...] = (x_ref[...] * scale).astype(o_ref.dtype)


# ----------------------------------------------------------------------------
# pallas_call wrappers
# ----------------------------------------------------------------------------
def _drop_path_aligned(x2, keep_f32, inv_keep_prob, dtype_bytes):
    """F % 128 == 0 path: per-sample lane-dense tiles + dropped-sample DMA skip."""
    B, F = x2.shape
    rows = F // _LANE
    x3 = x2.reshape(B, rows, _LANE)                      # metadata-only reshape

    sublane = max(32 // dtype_bytes, 8)                  # 8 f32, 16 bf16, 32 int8
    max_rows = max(_TARGET_TILE_BYTES // (_LANE * dtype_bytes), sublane)
    max_rows = (max_rows // sublane) * sublane
    tr = min(max_rows, pl.cdiv(rows, sublane) * sublane)
    n_tiles = pl.cdiv(rows, tr)                          # partial last tile is masked

    keep_i32 = keep_f32.astype(jnp.int32)                # (B,) in {0, 1}
    kernel = functools.partial(
        _drop_path_kernel_per_sample, inv_keep_prob=float(inv_keep_prob)
    )

    out3 = pl.pallas_call(
        kernel,
        out_shape=jax.ShapeDtypeStruct((B, rows, _LANE), x3.dtype),
        grid_spec=pltpu.PrefetchScalarGridSpec(
            num_scalar_prefetch=1,
            grid=(B, n_tiles),
            in_specs=[
                # Dropped sample -> block index pinned at (b, 0, 0): no new DMA.
                pl.BlockSpec((1, tr, _LANE),
                             lambda b, t, keep: (b, t * keep[b], 0)),
            ],
            out_specs=pl.BlockSpec((1, tr, _LANE),
                                   lambda b, t, keep: (b, t, 0)),
        ),
        compiler_params=pltpu.CompilerParams(
            dimension_semantics=("parallel", "parallel"),
            vmem_limit_bytes=_VMEM_LIMIT_BYTES,
        ),
    )(keep_i32, x3)
    return out3.reshape(B, F)


def _drop_path_ragged(x2, keep_f32, inv_keep_prob, dtype_bytes):
    """F % 128 != 0 path: full-batch (B, tf) column slabs, zero padding."""
    B, F = x2.shape
    scale = (keep_f32 * inv_keep_prob).reshape(B, 1).astype(jnp.float32)

    # Column tile: a multiple of 128 lanes sized so one (B, tf) block ~= target.
    tf = max((_TARGET_TILE_BYTES // (B * dtype_bytes)) // _LANE, 1) * _LANE
    tf = min(tf, pl.cdiv(F, _LANE) * _LANE)
    n_tiles = pl.cdiv(F, tf)                             # ragged last block is masked

    return pl.pallas_call(
        _drop_path_kernel_batch_cols,
        out_shape=jax.ShapeDtypeStruct((B, F), x2.dtype),
        grid=(n_tiles,),
        in_specs=[
            pl.BlockSpec((B, 1), lambda t: (0, 0)),      # resident per-sample scale
            pl.BlockSpec((B, tf), lambda t: (0, t)),
        ],
        out_specs=pl.BlockSpec((B, tf), lambda t: (0, t)),
        compiler_params=pltpu.CompilerParams(
            dimension_semantics=("parallel",),
            vmem_limit_bytes=_VMEM_LIMIT_BYTES,
        ),
    )(scale, x2)


# ----------------------------------------------------------------------------
# Public API (mirrors the PyTorch module)
# ----------------------------------------------------------------------------
def drop_path(x, rand, drop_prob: float = 0.0, training: bool = False):
    """JAX/Pallas equivalent of the PyTorch `drop_path` function.

    `rand` holds the per-sample uniform draws (any shape with B elements),
    standing in for `torch.rand` since the RNG sources differ.
    """
    if drop_prob == 0.0 or not training:
        return x
    if drop_prob >= 1.0:
        # keep_prob == 0: every path dropped (PyTorch would yield NaN = x/0 * 0).
        return jnp.zeros_like(x)

    keep_prob = 1.0 - float(drop_prob)
    inv_keep_prob = 1.0 / keep_prob

    orig_shape = x.shape
    B = orig_shape[0]
    F = math.prod(orig_shape[1:]) if len(orig_shape) > 1 else 1

    rand_1d = rand.reshape(B).astype(jnp.float32)
    # PyTorch: random_tensor = (keep_prob + torch.rand(...)).floor_() -> {0., 1.}
    keep_f32 = jnp.floor(keep_prob + rand_1d)            # (B,) in {0., 1.}

    # Tiny per-sample feature count: fused XLA multiply beats kernel overhead.
    if F < _LANE:
        scale = (keep_f32 * inv_keep_prob).reshape((B,) + (1,) * (x.ndim - 1))
        return (x * scale.astype(x.dtype)).astype(x.dtype)

    x2 = x.reshape(B, F)                                  # metadata-only reshape
    dtype_bytes = jnp.dtype(x.dtype).itemsize

    if F % _LANE == 0:
        out2 = _drop_path_aligned(x2, keep_f32, inv_keep_prob, dtype_bytes)
    else:
        out2 = _drop_path_ragged(x2, keep_f32, inv_keep_prob, dtype_bytes)
    return out2.reshape(orig_shape)


class DropPath:
    """Thin module-style wrapper mirroring the PyTorch nn.Module."""

    def __init__(self, drop_prob=None):
        self.drop_prob = drop_prob
        self.training = True

    def __call__(self, x, rand):
        return drop_path(x, rand, self.drop_prob, self.training)


def _reference(x, rand, keep_prob):
    """Pure-JAX reference with the same semantics as the PyTorch code."""
    B = x.shape[0]
    mask = jnp.floor(keep_prob + rand.reshape((B,) + (1,) * (x.ndim - 1)))
    return x / keep_prob * mask


if __name__ == "__main__":
    key = jax.random.PRNGKey(0)
    kx1, kx2, kx3 = jax.random.split(key, 3)

    drop_prob = 0.25
    keep_prob = 1.0 - drop_prob
    mod = DropPath(drop_prob)
    mod.training = True

    # ---- main case: (B, C, H, W) = (2, 4, 16, 16) -> F = 1024 (aligned path) ----
    x = jax.random.normal(kx1, (2, 4, 16, 16), dtype=jnp.float32)
    # Deterministic uniforms chosen so one sample is dropped and one kept,
    # exercising both pl.when branches and the DMA-skip index_map.
    rand = jnp.array([[0.10], [0.90]], dtype=jnp.float32)
    y = mod(x, rand)
    jax.block_until_ready(y)
    assert y.shape == x.shape and y.dtype == x.dtype
    y_ref = _reference(x, rand, keep_prob)
    assert jnp.allclose(y, y_ref, rtol=1e-6, atol=1e-6), "aligned-path mismatch"

    # ---- non-128-aligned F: (2, 7, 24) -> F = 168 (no-pad ragged path) ----------
    x2 = jax.random.normal(kx2, (2, 7, 24), dtype=jnp.float32)
    rand2 = jnp.array([[0.95], [0.05]], dtype=jnp.float32)
    y2 = mod(x2, rand2)
    jax.block_until_ready(y2)
    y2_ref = _reference(x2, rand2, keep_prob)
    assert jnp.allclose(y2, y2_ref, rtol=1e-6, atol=1e-6), "ragged-path mismatch"

    # ---- tiny per-sample features: (2, 3, 5) -> fused XLA fallback --------------
    x3 = jax.random.normal(kx3, (2, 3, 5), dtype=jnp.float32)
    rand3 = jnp.array([[0.50], [0.70]], dtype=jnp.float32)
    y3 = mod(x3, rand3)
    jax.block_until_ready(y3)
    y3_ref = _reference(x3, rand3, keep_prob)
    assert jnp.allclose(y3, y3_ref, rtol=1e-6, atol=1e-6), "fallback-path mismatch"

    # ---- eval mode -> identity (handled in wrapper) ------------------------------
    mod.training = False
    y_eval = mod(x, rand)
    jax.block_until_ready(y_eval)
    assert jnp.allclose(y_eval, x), "eval-path should be identity"

    print("KERNEL_OK")
</pallas_src>

<mosaic_0001>
module attributes {stable_mosaic.version = 11 : i64} {
  func.func @_drop_path_kernel_per_sample(%arg0: i32, %arg1: i32, %arg2: memref<2xi32, #tpu.memory_space<smem>>, %arg3: memref<1x8x128xf32, #tpu.memory_space<vmem>>, %arg4: memref<1x8x128xf32, #tpu.memory_space<vmem>>) attributes {dimension_semantics = [#tpu.dimension_semantics<parallel>, #tpu.dimension_semantics<parallel>], iteration_bounds = array<i64: 2, 1>, scalar_prefetch = 1 : i64, scratch_operands = 0 : i64, tpu.core_type = #tpu.core_type<tc>, window_params = [{transform_indices = @transform_0, window_bounds = array<i64: 1, 8, 128>}, {transform_indices = @transform_1, window_bounds = array<i64: 1, 8, 128>}]} {
    %0 = arith.index_cast %arg0 : i32 to index
    %1 = memref.load %arg2[%0] : memref<2xi32, #tpu.memory_space<smem>>
    %c0_i32 = arith.constant 0 : i32
    %2 = arith.cmpi eq, %1, %c0_i32 : i32
    %3 = arith.extui %2 : i1 to i32
    %c0_i32_0 = arith.constant 0 : i32
    %4 = arith.cmpi ne, %3, %c0_i32_0 : i32
    scf.if %4 {
      %cst = arith.constant 0.000000e+00 : f32
      %10 = vector.broadcast %cst : f32 to vector<1x8x128xf32>
      %c0 = arith.constant 0 : index
      %c0_3 = arith.constant 0 : index
      %c0_4 = arith.constant 0 : index
      %11 = vector.load %arg4[%c0, %c0_3, %c0_4] : memref<1x8x128xf32, #tpu.memory_space<vmem>>, vector<1x8x128xf32>
      tpu.vector_store %arg4[%c0, %c0_3, %c0_4], %10 {strides = array<i32>} : memref<1x8x128xf32, #tpu.memory_space<vmem>>, vector<1x8x128xf32>,
    } else {
    }
    %5 = arith.index_cast %arg0 : i32 to index
    %6 = memref.load %arg2[%5] : memref<2xi32, #tpu.memory_space<smem>>
    %c0_i32_1 = arith.constant 0 : i32
    %7 = arith.cmpi ne, %6, %c0_i32_1 : i32
    %8 = arith.extui %7 : i1 to i32
    %c0_i32_2 = arith.constant 0 : i32
    %9 = arith.cmpi ne, %8, %c0_i32_2 : i32
    scf.if %9 {
      %c0 = arith.constant 0 : index
      %c0_3 = arith.constant 0 : index
      %c0_4 = arith.constant 0 : index
      %10 = vector.load %arg3[%c0, %c0_3, %c0_4] : memref<1x8x128xf32, #tpu.memory_space<vmem>>, vector<1x8x128xf32>
      %cst = arith.constant 1.33333337 : f32
      %11 = vector.broadcast %cst : f32 to vector<1x8x128xf32>
      %12 = arith.mulf %10, %11 : vector<1x8x128xf32>
      %c0_5 = arith.constant 0 : index
      %c0_6 = arith.constant 0 : index
      %c0_7 = arith.constant 0 : index
      %13 = vector.load %arg4[%c0_5, %c0_6, %c0_7] : memref<1x8x128xf32, #tpu.memory_space<vmem>>, vector<1x8x128xf32>
      tpu.vector_store %arg4[%c0_5, %c0_6, %c0_7], %12 {strides = array<i32>} : memref<1x8x128xf32, #tpu.memory_space<vmem>>, vector<1x8x128xf32>,
    } else {
    }
    return
  }
  func.func @transform_0(%arg0: i32, %arg1: i32, %arg2: memref<2xi32, #tpu.memory_space<smem>>) -> (i32, i32, i32) {
    %0 = arith.index_cast %arg0 : i32 to index
    %1 = memref.load %arg2[%0] : memref<2xi32, #tpu.memory_space<smem>>
    %2 = arith.muli %arg1, %1 : i32
    %c0_i32 = arith.constant 0 : i32
    %c0_i32_0 = arith.constant 0 : i32
    return %arg0, %2, %c0_i32 : i32, i32, i32
  }
  func.func @transform_1(%arg0: i32, %arg1: i32, %arg2: memref<2xi32, #tpu.memory_space<smem>>) -> (i32, i32, i32) {
    %c0_i32 = arith.constant 0 : i32
    %c0_i32_0 = arith.constant 0 : i32
    return %arg0, %arg1, %c0_i32 : i32, i32, i32
  }
}

</mosaic_0001>

<bundles_post_ra>
// kernel: tpu_custom_call.1
= control target key start
LH: loop header
LB: loop body
LE: loop exit
PB: predicated region body
PF: predicated region fallthrough
CT: control target
= control target key end

     0   :  { %s486_s12 = smov [#allocation3]   ;;  %s628_s0 = inlined_call_operand.hbm [shape: s32[2], index: 0, kind: input, shape index: {}]   ;;  %s629_s1 = inlined_call_operand.hbm [shape: f32[2,8,128], index: 1, kind: input, shape index: {}]   ;;  %s630_s2 = inlined_call_operand.hbm [shape: f32[2,8,128], index: 2, kind: output, shape index: {}]  }
   0x1   :  { %s8_s11 = sshll.u32 %s628_s0, 4  ;;  %s9_s11 = int_to_ptr.hbm [resolvable:$true] %s8_s11 }
   0x2   :  { %11 = dma.hbm_to_smem %s9_s11, 16, %s486_s12, [#allocation2] }
   0x3   :  { %452 = dma.done.wait [#allocation2], 16 }
   0x4   :  { %453 = vsyncadd [#allocation2], 4294967280 }
   0x5   :  { %14 = sfence }
   0x6   :  { %15 = vsyncpa [#allocation5], 0 }
   0x7   :  { %17 = vsyncpa [#allocation5 + $0x1], 0 }
   0x8   :  { %18 = vsyncpa [#allocation6], 0 }
   0x9   :  { %20 = vsyncpa [#allocation6 + $0x1], 0  ;;  %s506_s13 = smov 0   ;;  %s508_s14 = smov 0  }
   0xa   :  { %s510_s15 = smov 0   ;;  %s512_s16 = smov 0  }
   0xb   :  { %s514_s17 = smov 0   ;;  %s516_s0 = smov 0  }
   0xc LB: > { %s279_s18 = sadd.s32 4294967295, %s484_s0   ;;  %s280_s19 = sadd.s32 4294967294, %s484_s0   ;;  %s484_s0 = sphi %s516_s0, %s26_s0   ;;  %s480_s17 = sphi %s514_s17, %s639_s17   ;;  %s476_s16 = sphi %s512_s16, %s638_s16   ;;  %s472_s15 = sphi %s510_s15, %s637_s15   ;;  %s468_s14 = sphi %s508_s14, %s636_s14   ;;  %s464_s13 = sphi %s506_s13, %s635_s13  }
   0xd   : > { %s38_s20 = sadd.s32 1, %s480_s17  ;;  %s51_s21 = sadd.s32 1, %s472_s15 }
   0xe   : > { %p40_p0 = scmp.ge.s32.totalorder %s38_s20, 2  ;;  %p58_p1 = scmp.ne.s32.totalorder %s472_s15, %s468_s14 }
   0xf   : > { %p59_p2 = scmp.eq.s32.totalorder %s484_s0, 0  ;;  %p64_p3 = scmp.ne.s32.totalorder %s468_s14, %s464_s13 }
  0x10   : > { %s641_s20 = smov (%p40_p0, %s38_s20), 0  ;;  %p65_p5 = scmp.eq.s32.totalorder %s279_s18, 0 }
  0x11   : > { %p547_p4 = por %p59_p2, %p58_p1  ;;  %s46_s23 = ssub.s32 %s480_s17, %s641_s20 }
  0x12   : > { %p90_p6 = scmp.eq.s32.totalorder %s279_s18, 1  ;;  %p49_p7 = scmp.eq.s32.totalorder %s46_s23, 0 }
  0x13   : > { %p553_p8 = por %p65_p5, %p64_p3  ;;  %p96_p10 = scmp.eq.s32.totalorder %s280_s19, 1 }
  0x14   : > { %p557_p9 = por %p90_p6, %p58_p1  ;;  %p282_p12 = scmp.ge.s32.totalorder %s484_s0, 2 }
  0x15   : > { %s562_s26 = scalar_select %p49_p7, %s472_s15, %s51_s21  }
  0x16   : > { %p564_p11 = por %p96_p10, %p64_p3  ;;  %p306_p13 = scmp.lt.s32.totalorder %s484_s0, 2 }
  0x17   : > { %s116_s28 = sand.u32 1, %s472_s15   ;;  %s284_s30 = sshll.u32 %s480_s17, 3 }
  0x18   : > { %s283_s29 = sshll.u32 %s116_s28, 3  ;;  %s127_s5 = scalar_lea.hbm %s629_s1, %s284_s30 }
  0x19   : > { %s120_s6 = scalar_lea.vmem [#allocation4], %s283_s29  ;;  %s129_s8 = sshll.u32 %s127_s5, 4  ;;  %s130_s8 = int_to_ptr.hbm [resolvable:$true] %s129_s8 }
  0x1a   : > { %s131_s7 = sshll.u32 %s120_s6, 4  ;;  %p299_p0 = pnand %p306_p13, %p547_p4  ;;  %s132_s7 = int_to_ptr.vmem [resolvable:$true] %s131_s7 }
  0x1b   : > { %p285_p1 = scmp.ge.s32.totalorder %s484_s0, 1  ;;  %p136_p2 = scmp.lt.s32.totalorder %s484_s0, 3 }
  0x1c   : > { %s117_s9 = scalar_lea.sflag [#allocation5], %s116_s28 }
  0x1d   : > { %301 = dma.hbm_to_vmem [thread:$0]  (!%p299_p0), %s130_s8, 128, %s132_s7, %s117_s9  }
  0x1e   : > { %p137_p3 = pnand %p285_p1, %p136_p2 }
  0x1f   : > { %s580_s10 = sand.u32 (!%p137_p3), 1, %s468_s14  }
  0x20   : > { %140 = sbr.rel (%p137_p3) target bundleno = 85 (0x55), region = 24  ;;  %s286_s11 = sshll.u32 (!%p137_p3), %s580_s10, 3 }
  0x21   : > { %s143_s12 = scalar_lea.sflag (!%p137_p3), [#allocation5], %s580_s10  ;;  %s146_s18 = scalar_lea.vmem (!%p137_p3), [#allocation4], %s286_s11 }
  0x25   : > { %455 = dma.done.wait (%p553_p8), %s143_s12, 128  }
  0x26   : > { %457 = vsyncadd (%p553_p8), %s143_s12, 4294967168  ;;  %s168_s19 = sld [smem:[#allocation3 + %s476_s16]]  ;;  %s165_s21 = scalar_lea.vmem [#allocation7], %s286_s11 }
  0x2c   : > { %p288_p4 = scmp.ne.s32.totalorder %s168_s19, 0 }
  0x2e   : > { %172 = sbr.rel (%p288_p4) target bundleno = 53 (0x35), region = 32 }
  0x33   : > { %v487_v0 = vmov 0.0  }
  0x34   : > { %173 = vst [vmem:[%s165_s21] sm:$0xff] %v487_v0 }
  0x35 PF: > { %s174_s22 = sld [smem:[#allocation3 + %s476_s16]] }
  0x3b   : > { %p289_p5 = scmp.eq.s32.totalorder %s174_s22, 0 }
  0x3d   : > { %178 = sbr.rel (%p289_p5) target bundleno = 70 (0x46), region = 36 }
  0x42   : > { %v179_v1 = vld [vmem:[%s146_s18] sm:$0xff] }
  0x43   : > { %v180_v2 = vmul.f32 1.3333334, %v179_v1 }
  0x45   : > { %181 = vst [vmem:[%s165_s21] sm:$0xff] %v180_v2 }
  0x46 PF: > { %s291_s23 = sshll.u32 %s476_s16, 3  ;;  %s196_s30 = sshll.u32 %s165_s21, 4  ;;  %s197_s30 = int_to_ptr.vmem [resolvable:$true] %s196_s30 }
  0x47   : > { %s194_s29 = scalar_lea.hbm %s630_s2, %s291_s23  ;;  %s183_s4 = scalar_lea.sflag [#allocation6], %s580_s10 }
  0x48   : > { %s198_s3 = sshll.u32 %s194_s29, 4  ;;  %s420_s16 = scalar_lea.hbm %s630_s2, 16  ;;  %s199_s3 = int_to_ptr.hbm [resolvable:$true] %s198_s3 }
  0x49   : > { %s414_s5 = sshra.s32 %s199_s3, 4  ;;  %s415_s5 = int_to_ptr.hbm [resolvable:$true] %s414_s5 }
  0x4a   : > { %s416_s6 = scalar_lea.hbm %s415_s5, 8  ;;  %p421_p10 = scmp.lt.s32.totalorder %s415_s5, %s630_s2 }
  0x4b   : > { %p417_p6 = scmp.ne.s32.totalorder %s415_s5, %s416_s6  ;;  %p422_p13 = scmp.lt.s32.totalorder %s420_s16, %s416_s6 }
  0x4d   : > { %p418_p7 = pnand %p417_p6, %p557_p9  ;;  %p423_p0 = por %p422_p13, %p421_p10 }
  0x4f   : > { %p419_p8 = pneg %p418_p7 }
  0x51   : > { %p424_p1 = pnand %p423_p0, %p419_p8 }
  0x53   : > { %427 = shalt.err (!%p424_p1)
}
  0x54   : > { %296 = dma.vmem_to_hbm [thread:$0]  (%p557_p9), %s197_s30, 128, %s199_s3, %s183_s4  }
  0x55 PF: > { %s210_s10 = sand.u32 1, %s464_s13   ;;  %p303_p2 = pnand %p282_p12, %p564_p11 }
  0x56   : > { %s211_s12 = scalar_lea.sflag [#allocation6], %s210_s10 }
  0x57   : > { %p304_p3 = pneg %p303_p2 }
  0x59   : > { %459 = dma.done.wait (%p304_p3), %s211_s12, 128  }
  0x5a   : > { %461 = vsyncadd (%p304_p3), %s211_s12, 4294967168  ;;  %s26_s0 = sadd.s32 1, %s484_s0   ;;  %s635_s13 = smov %s468_s14 }
  0x5b   : > { %p23_p4 = scmp.ge.s32.totalorder %s26_s0, 4   ;;  %s636_s14 = smov %s472_s15 }
  0x5c   : > { %s637_s15 = smov %s562_s26  ;;  %s638_s16 = smov %s480_s17 }
  0x5d   : > { %s639_s17 = smov %s641_s20  ;;  %25 = sbr.rel (!%p23_p4) target bundleno = 12 (0xc), region = 77 }
  0x62   :  { %217 = vsyncpa [#allocation5], 1 }
  0x63   :  { %219 = vsyncpa [#allocation5 + $0x1], 1 }
  0x64   :  { %220 = vsyncpa [#allocation6], 1 }
  0x65   :  { %222 = vsyncpa [#allocation6 + $0x1], 1 }

</bundles_post_ra>
